<compile_context>
chip_gen: v6e
topology: v6e:2x2x1
jax: 0.10.0
libtpu: 0.0.40
codegen_flags: <defaults>
</compile_context>

<pallas_src>
import functools

import numpy as np
import jax
import jax.numpy as jnp
from jax.experimental import pallas as pl
from jax.experimental.pallas import tpu as pltpu


def sigmoid_rampup(current, rampup_length):
    """Exponential rampup (host-side python scalar, same as the torch module)."""
    if rampup_length == 0:
        return 1.0
    current = np.clip(current, 0.0, rampup_length)
    phase = 1.0 - current / rampup_length
    return float(np.exp(-5.0 * phase * phase))


def _round_up(x, m):
    return ((x + m - 1) // m) * m


def _elr_plus_kernel(logits_ref, y_ref, q_ref, ypred_ref, stats_ref, *, renorm):
    """One [TB, C] tile in native layout: batch rows on sublanes, classes on lanes."""
    logits = logits_ref[...].astype(jnp.float32)              # (TB, C), f32 in-register

    # softmax / log_softmax over the class (lane) axis — XLU lane reduces.
    m = jnp.max(logits, axis=-1, keepdims=True)               # (TB, 1)
    shifted = logits - m
    e = jnp.exp(shifted)                                      # single EUP exp pass
    s = jnp.sum(e, axis=-1, keepdims=True)                    # (TB, 1)
    inv_s = pl.reciprocal(s)                                  # exact (approx breaks 1e-6 atol)
    log_softmax = shifted - jnp.log(s)                        # == F.log_softmax(output)
    y_pred = jnp.clip(e * inv_s, 1e-4, 1.0 - 1e-4)            # softmax + clamp
    ypred_ref[...] = y_pred.astype(ypred_ref.dtype)           # native layout / native dtype

    y_lab = y_ref[...].astype(jnp.float32)
    q = q_ref[...].astype(jnp.float32)

    if renorm:
        # num_classes == 100 branch, fused: y_labeled = y_labeled*q / rowsum.
        # No epsilon guard: a genuinely all-zero row diverges (inf/NaN) exactly
        # like the torch reference; out-of-bounds boundary rows never reach HBM.
        y_lab = y_lab * q
        denom = jnp.sum(y_lab, axis=-1, keepdims=True)        # (TB, 1)
        y_lab = y_lab * pl.reciprocal(denom)                  # exact; row-sized, cheap

    # Per-example partials, written per-row into the (TB, 2) stats block:
    #   col 0: cross entropy   -sum_c y_labeled * log_softmax
    #   col 1: ELR regularizer  log(1 - sum_c q * y_pred)
    stats_ref[:, 0:1] = -jnp.sum(y_lab * log_softmax, axis=-1, keepdims=True)
    stats_ref[:, 1:2] = jnp.log(1.0 - jnp.sum(q * y_pred, axis=-1, keepdims=True))


def _choose_tile_b(n, c):
    """Batch-tile (sublane) size: as big as a ~10 MiB double-buffered block budget
    allows (amortizes the ~0.35 us/step overhead), capped so larger batches get
    >= 2 grid steps (v7x megacore can then split the "parallel" axis)."""
    lane_c = _round_up(c, 128)                       # VMEM lane padding of the C axis
    # per batch-row, double buffered: 3 inputs + y_pred (f32 worst case) + (.,2) stats
    per_row = 2 * (4 * lane_c * 4 + 128 * 4)
    cap = min(4096, (10 * 1024 * 1024) // per_row)
    cap = max(8, (cap // 8) * 8)
    if n <= 8 or (n <= cap and n < 512):
        return n                                     # one full-array block, no padding
    tile = min(cap, _round_up(pl.cdiv(n, 2), 8))     # >= 2 steps -> both v7x TCs get work
    return max(8, (tile // 8) * 8)


@functools.partial(jax.jit, static_argnames=("renorm", "tile_b"))
def _forward_jit(output, y_labeled, q, coef, *, renorm, tile_b=None):
    n, c = output.shape
    if tile_b is None:
        tile_b = _choose_tile_b(n, c)
    grid = pl.cdiv(n, tile_b)

    block = pl.BlockSpec((tile_b, c), lambda i: (i, 0))
    stats_block = pl.BlockSpec((tile_b, 2), lambda i: (i, 0))

    y_pred, stats = pl.pallas_call(
        functools.partial(_elr_plus_kernel, renorm=renorm),
        out_shape=(
            jax.ShapeDtypeStruct((n, c), output.dtype),     # y_pred, caller's dtype
            jax.ShapeDtypeStruct((n, 2), jnp.float32),      # per-example [CE, ELR-reg]
        ),
        grid_spec=pltpu.PrefetchScalarGridSpec(
            num_scalar_prefetch=0,
            grid=(grid,),
            in_specs=[block, block, block],
            out_specs=[block, stats_block],
        ),
        compiler_params=pltpu.CompilerParams(
            dimension_semantics=("parallel",),              # independent tiles
            vmem_limit_bytes=32 * 1024 * 1024,              # headroom over v5e's 16 MiB default
        ),
    )(output, y_labeled, q)

    totals = jnp.sum(stats, axis=0) * (1.0 / n)             # [mean CE, mean reg]
    final_loss = totals[0] + coef * totals[1]
    return final_loss, y_pred


def elr_plus_loss_forward(iteration, output, y_labeled, q, *,
                          lamd, coef_step, num_classes=10, tile_b=None):
    """Pallas implementation of elr_plus_loss.forward.

    Returns (final_loss, y_pred) matching the torch module semantics
    (y_pred is the clamped softmax of `output`, shape [N, C], output.dtype).
    `tile_b`, if given, must be a multiple of 8 (batch-tile override).
    """
    # Host-side rampup scalar, exactly like the torch module.
    coef = sigmoid_rampup(iteration, coef_step) * lamd
    return _forward_jit(output, y_labeled, q, jnp.float32(coef),
                        renorm=(num_classes == 100), tile_b=tile_b)


def _reference_forward(iteration, output, y_labeled, q, *, lamd, coef_step,
                       num_classes=10):
    """Pure-JAX reference mirroring the torch forward."""
    out_f32 = output.astype(jnp.float32)
    y_pred = jax.nn.softmax(out_f32, axis=1)
    y_pred = jnp.clip(y_pred, 1e-4, 1.0 - 1e-4)
    if num_classes == 100:
        y_labeled = y_labeled * q
        y_labeled = y_labeled / jnp.sum(y_labeled, axis=1, keepdims=True)
    ce_loss = jnp.mean(-jnp.sum(y_labeled * jax.nn.log_softmax(out_f32, axis=1), axis=-1))
    reg = jnp.mean(jnp.log(1.0 - jnp.sum(q * y_pred, axis=1)))
    final = ce_loss + sigmoid_rampup(iteration, coef_step) * (lamd * reg)
    return final, y_pred.astype(output.dtype)


# TODO(synk): update_hist (pred_hist EMA + mixup construction of q) is module
# state bookkeeping outside forward; here `q` is taken as an explicit input.

if __name__ == "__main__":
    lamd = 3.0
    coef_step = 4000
    iteration = 1500

    key = jax.random.PRNGKey(0)

    # Case 1/2: small batches, C=10 (standard path) and C=100 (fused renorm).
    # Case 3: multi-tile parallel grid with a ragged last block (N=300, tile 128).
    cases = [
        dict(N=16, C=10, num_classes=10, tile_b=None),
        dict(N=16, C=100, num_classes=100, tile_b=None),
        dict(N=300, C=10, num_classes=10, tile_b=128),
    ]

    for case in cases:
        N, C = case["N"], case["C"]
        k1, k2, k3, key = jax.random.split(key, 4)
        output = jax.random.normal(k1, (N, C), dtype=jnp.float32) * 2.0
        labels = jax.random.randint(k2, (N,), 0, C)
        # smoothed labels so the C=100 renormalization is non-trivial
        y_labeled = jax.nn.one_hot(labels, C, dtype=jnp.float32) * 0.9 + 0.1 / C
        q = jax.nn.softmax(jax.random.normal(k3, (N, C), dtype=jnp.float32), axis=1)

        loss, y_pred = elr_plus_loss_forward(
            iteration, output, y_labeled, q,
            lamd=lamd, coef_step=coef_step,
            num_classes=case["num_classes"], tile_b=case["tile_b"])
        loss = jax.block_until_ready(loss)
        y_pred = jax.block_until_ready(y_pred)

        ref_loss, ref_y_pred = _reference_forward(
            iteration, output, y_labeled, q,
            lamd=lamd, coef_step=coef_step, num_classes=case["num_classes"])

        assert jnp.allclose(loss, ref_loss, rtol=1e-5, atol=1e-5), (case, loss, ref_loss)
        assert jnp.allclose(y_pred, ref_y_pred, rtol=1e-5, atol=1e-6), case

    print("KERNEL_OK")
</pallas_src>

<mosaic_0001>
module attributes {stable_mosaic.version = 11 : i64} {
  func.func @_elr_plus_kernel(%arg0: i32, %arg1: memref<16x10xf32, #tpu.memory_space<vmem>>, %arg2: memref<16x10xf32, #tpu.memory_space<vmem>>, %arg3: memref<16x10xf32, #tpu.memory_space<vmem>>, %arg4: memref<16x10xf32, #tpu.memory_space<vmem>>, %arg5: memref<16x2xf32, #tpu.memory_space<vmem>>) attributes {dimension_semantics = [#tpu.dimension_semantics<parallel>], iteration_bounds = array<i64: 1>, scalar_prefetch = 0 : i64, scratch_operands = 0 : i64, tpu.core_type = #tpu.core_type<tc>, window_params = [{transform_indices = @transform_0, window_bounds = array<i64: 16, 10>}, {transform_indices = @transform_1, window_bounds = array<i64: 16, 10>}, {transform_indices = @transform_2, window_bounds = array<i64: 16, 10>}, {transform_indices = @transform_3, window_bounds = array<i64: 16, 10>}, {transform_indices = @transform_4, window_bounds = array<i64: 16, 2>}]} {
    %c0 = arith.constant 0 : index
    %c0_0 = arith.constant 0 : index
    %0 = vector.load %arg1[%c0, %c0_0] : memref<16x10xf32, #tpu.memory_space<vmem>>, vector<16x10xf32>
    %cst = arith.constant dense<0xFF800000> : vector<16xf32>
    %1 = vector.multi_reduction <maximumf>, %0, %cst [1] : vector<16x10xf32> to vector<16xf32>
    %2 = vector.shape_cast %1 : vector<16xf32> to vector<16x1xf32>
    %3 = vector.broadcast %2 : vector<16x1xf32> to vector<16x10xf32>
    %4 = arith.subf %0, %3 : vector<16x10xf32>
    %5 = math.exp %4 : vector<16x10xf32>
    %cst_1 = arith.constant dense<0.000000e+00> : vector<16xf32>
    %6 = vector.multi_reduction <add>, %5, %cst_1 [1] : vector<16x10xf32> to vector<16xf32>
    %7 = vector.shape_cast %6 : vector<16xf32> to vector<16x1xf32>
    %8 = tpu.reciprocal %7 : vector<16x1xf32> -> vector<16x1xf32>
    %9 = math.log %7 : vector<16x1xf32>
    %10 = vector.broadcast %9 : vector<16x1xf32> to vector<16x10xf32>
    %11 = arith.subf %4, %10 : vector<16x10xf32>
    %12 = vector.broadcast %8 : vector<16x1xf32> to vector<16x10xf32>
    %13 = arith.mulf %5, %12 : vector<16x10xf32>
    %cst_2 = arith.constant 9.99999974E-5 : f32
    %cst_3 = arith.constant 0.999899983 : f32
    %14 = vector.broadcast %cst_2 : f32 to vector<16x10xf32>
    %15 = arith.maximumf %14, %13 : vector<16x10xf32>
    %16 = vector.broadcast %cst_3 : f32 to vector<16x10xf32>
    %17 = arith.minimumf %16, %15 : vector<16x10xf32>
    %c0_4 = arith.constant 0 : index
    %c0_5 = arith.constant 0 : index
    %18 = vector.load %arg4[%c0_4, %c0_5] : memref<16x10xf32, #tpu.memory_space<vmem>>, vector<16x10xf32>
    tpu.vector_store %arg4[%c0_4, %c0_5], %17 {strides = array<i32>} : memref<16x10xf32, #tpu.memory_space<vmem>>, vector<16x10xf32>,
    %c0_6 = arith.constant 0 : index
    %c0_7 = arith.constant 0 : index
    %19 = vector.load %arg2[%c0_6, %c0_7] : memref<16x10xf32, #tpu.memory_space<vmem>>, vector<16x10xf32>
    %c0_8 = arith.constant 0 : index
    %c0_9 = arith.constant 0 : index
    %20 = vector.load %arg3[%c0_8, %c0_9] : memref<16x10xf32, #tpu.memory_space<vmem>>, vector<16x10xf32>
    %21 = arith.mulf %19, %11 : vector<16x10xf32>
    %cst_10 = arith.constant dense<0.000000e+00> : vector<16xf32>
    %22 = vector.multi_reduction <add>, %21, %cst_10 [1] : vector<16x10xf32> to vector<16xf32>
    %23 = vector.shape_cast %22 : vector<16xf32> to vector<16x1xf32>
    %cst_11 = arith.constant 0.000000e+00 : f32
    %24 = vector.broadcast %cst_11 : f32 to vector<16x1xf32>
    %25 = arith.subf %24, %23 : vector<16x1xf32>
    %c0_12 = arith.constant 0 : index
    %c0_13 = arith.constant 0 : index
    %26 = vector.load %arg5[%c0_12, %c0_13] : memref<16x2xf32, #tpu.memory_space<vmem>>, vector<16x1xf32>
    tpu.vector_store %arg5[%c0_12, %c0_13], %25 {strides = array<i32>} : memref<16x2xf32, #tpu.memory_space<vmem>>, vector<16x1xf32>,
    %27 = arith.mulf %20, %17 : vector<16x10xf32>
    %cst_14 = arith.constant dense<0.000000e+00> : vector<16xf32>
    %28 = vector.multi_reduction <add>, %27, %cst_14 [1] : vector<16x10xf32> to vector<16xf32>
    %29 = vector.shape_cast %28 : vector<16xf32> to vector<16x1xf32>
    %cst_15 = arith.constant 1.000000e+00 : f32
    %30 = vector.broadcast %cst_15 : f32 to vector<16x1xf32>
    %31 = arith.subf %30, %29 : vector<16x1xf32>
    %32 = math.log %31 : vector<16x1xf32>
    %c0_16 = arith.constant 0 : index
    %c1 = arith.constant 1 : index
    %33 = vector.load %arg5[%c0_16, %c1] : memref<16x2xf32, #tpu.memory_space<vmem>>, vector<16x1xf32>
    tpu.vector_store %arg5[%c0_16, %c1], %32 {strides = array<i32>} : memref<16x2xf32, #tpu.memory_space<vmem>>, vector<16x1xf32>,
    return
  }
  func.func @transform_0(%arg0: i32) -> (i32, i32) {
    %c0_i32 = arith.constant 0 : i32
    %c0_i32_0 = arith.constant 0 : i32
    return %arg0, %c0_i32 : i32, i32
  }
  func.func @transform_1(%arg0: i32) -> (i32, i32) {
    %c0_i32 = arith.constant 0 : i32
    %c0_i32_0 = arith.constant 0 : i32
    return %arg0, %c0_i32 : i32, i32
  }
  func.func @transform_2(%arg0: i32) -> (i32, i32) {
    %c0_i32 = arith.constant 0 : i32
    %c0_i32_0 = arith.constant 0 : i32
    return %arg0, %c0_i32 : i32, i32
  }
  func.func @transform_3(%arg0: i32) -> (i32, i32) {
    %c0_i32 = arith.constant 0 : i32
    %c0_i32_0 = arith.constant 0 : i32
    return %arg0, %c0_i32 : i32, i32
  }
  func.func @transform_4(%arg0: i32) -> (i32, i32) {
    %c0_i32 = arith.constant 0 : i32
    %c0_i32_0 = arith.constant 0 : i32
    return %arg0, %c0_i32 : i32, i32
  }
}

</mosaic_0001>

<bundles_post_ra>
// kernel: _forward_jit.1
= control target key start
LH: loop header
LB: loop body
LE: loop exit
PB: predicated region body
PF: predicated region fallthrough
CT: control target
= control target key end

     0   :  { %10 = vsyncpa [#allocation3], 0  ;;  %s336_s0 = inlined_call_operand.hbm [shape: f32[16,10], index: 0, kind: input, shape index: {}]   ;;  %s337_s1 = inlined_call_operand.hbm [shape: f32[16,10], index: 1, kind: input, shape index: {}]   ;;  %s338_s2 = inlined_call_operand.hbm [shape: f32[16,10], index: 2, kind: input, shape index: {}]   ;;  %s339_s3 = inlined_call_operand.hbm [shape: f32[16,10], index: 3, kind: output, shape index: {0}]   ;;  %s340_s4 = inlined_call_operand.vmem [shape: f32[16,2], index: 4, kind: output, shape index: {1}]  }
   0x1   :  { %11 = vsyncpa [#allocation6], 0 }
   0x2   :  { %12 = vsyncpa [#allocation4], 0  ;;  %s259_s15 = smov [#allocation5]   ;;  %s260_s17 = smov [#allocation2]  }
   0x3   :  { %s30_s16 = sshll.u32 %s259_s15, 4  ;;  %s18_s18 = sshll.u32 %s260_s17, 4  ;;  %s31_s16 = int_to_ptr.vmem [resolvable:$true] %s30_s16  ;;  %s19_s18 = int_to_ptr.vmem [resolvable:$true] %s18_s18 }
   0x4   :  { %s181_s19 = scalar_lea.vmem %s31_s16, 256  ;;  %p186_p1 = scmp.lt.s32.totalorder %s31_s16, %s31_s16 }
   0x5   :  { %p182_p0 = scmp.ne.s32.totalorder %s31_s16, %s181_s19  ;;  %p187_p2 = scmp.lt.s32.totalorder %s181_s19, %s181_s19 }
   0x7   :  { %p188_p3 = por %p187_p2, %p186_p1 }
   0x9   :  { %p189_p4 = pnand %p188_p3, %p182_p0 }
   0xb   :  { %192 = shalt.err (!%p189_p4)
}
   0xc   :  { %s261_s20 = smov 128   ;;  %s262_s21 = smov 8  }
   0xd   :  { %36 = dma.hbm_to_vmem [thread:$0]  %s337_s1, 256, %s31_s16, [#allocation6], %s261_s20, %s261_s20, %s262_s21  }
   0xe   :  { %s201_s24 = scalar_lea.vmem %s19_s18, 256  ;;  %p206_p6 = scmp.lt.s32.totalorder %s19_s18, %s19_s18 }
   0xf   :  { %p202_p5 = scmp.ne.s32.totalorder %s19_s18, %s201_s24  ;;  %p207_p7 = scmp.lt.s32.totalorder %s201_s24, %s201_s24 }
  0x11   :  { %p208_p8 = por %p207_p7, %p206_p6 }
  0x13   :  { %p209_p9 = pnand %p208_p8, %p202_p5 }
  0x15   :  { %212 = shalt.err (!%p209_p9)
}
  0x16   :  { %24 = dma.hbm_to_vmem [thread:$0]  %s336_s0, 256, %s19_s18, [#allocation3], %s261_s20, %s261_s20, %s262_s21  }
  0x17   :  { %s263_s27 = smov [#allocation7]  }
  0x18   :  { %s42_s28 = sshll.u32 %s263_s27, 4  ;;  %s43_s28 = int_to_ptr.vmem [resolvable:$true] %s42_s28 }
  0x19   :  { %s221_s29 = scalar_lea.vmem %s43_s28, 256  ;;  %p226_p11 = scmp.lt.s32.totalorder %s43_s28, %s43_s28 }
  0x1a   :  { %p222_p10 = scmp.ne.s32.totalorder %s43_s28, %s221_s29  ;;  %p227_p12 = scmp.lt.s32.totalorder %s221_s29, %s221_s29 }
  0x1c   :  { %p228_p13 = por %p227_p12, %p226_p11 }
  0x1e   :  { %p229_p0 = pnand %p228_p13, %p222_p10 }
  0x20   :  { %232 = shalt.err (!%p229_p0)
}
  0x21   :  { %48 = dma.hbm_to_vmem [thread:$0]  %s338_s2, 256, %s43_s28, [#allocation6], %s261_s20, %s261_s20, %s262_s21  }
  0x22   :  { %253 = dma.done.wait [#allocation3], 256  }
  0x23   :  { %254 = vsyncadd [#allocation3], 4294967040 }
  0x24   :  { %255 = dma.done.wait [#allocation6], 512  }
  0x25   :  { %256 = vsyncadd [#allocation6], 4294966784  ;;  %vm60_vm0 = vcmask 80896   ;;  %v58_v0 = vld [vmem:[#allocation2] sm:$0xff]  ;;  %v59_v1 = vld [vmem:[#allocation2 + $0x8] sm:$0xff]  ;;  %s264_s0 = smov [#allocation8]  }
  0x26   :  { %v61_v2 = vsel %vm60_vm0, %v58_v0, -inf  ;;  %v64_v3 = vsel %vm60_vm0, %v59_v1, -inf  ;;  %v97_v22 = vld [vmem:[#allocation7] sm:$0xff]  ;;  %v95_v28 = vld [vmem:[#allocation5] sm:$0xff]  ;;  %v98_v31 = vld [vmem:[#allocation7 + $0x8] sm:$0xff]  ;;  %s134_s2 = sshll.u32 %s264_s0, 4  ;;  %s135_s2 = int_to_ptr.vmem [resolvable:$true] %s134_s2 }
  0x27   :  { %62 = vmax.xlane.f32.xlu0 %v61_v2  ;;  %v96_v36 = vld [vmem:[#allocation5 + $0x8] sm:$0xff]  ;;  %s233_s5 = scalar_lea.vmem %s135_s2, 256  ;;  %p238_p2 = scmp.lt.s32.totalorder %s135_s2, %s135_s2 }
  0x28   :  { %p234_p1 = scmp.ne.s32.totalorder %s135_s2, %s233_s5  ;;  %p239_p3 = scmp.lt.s32.totalorder %s233_s5, %s233_s5 }
  0x2a   :  { %p240_p4 = por %p239_p3, %p238_p2 }
  0x2b   :  { %65 = vmax.xlane.f32.xlu0 %v64_v3 }
  0x2c   :  { %p241_p5 = pnand %p240_p4, %p234_p1 }
  0xb0   :  { %v63_v4 = vpop.xlane.xlu0 %62 }
  0xb1   :  { %v67_v5 = vsub.f32 %v58_v0, %v63_v4 }
  0xb3   :  { %v69_v6 = vmul.f32 1.442695, %v67_v5 }
  0xb4   :  { %v66_v7 = vpop.xlane.xlu0 %65 }
  0xb5   :  { %157 = vpow2.f32 %v69_v6  ;;  %v68_v8 = vsub.f32 %v59_v1, %v66_v7 }
  0xb7   :  { %v71_v9 = vmul.f32 1.442695, %v68_v8 }
  0xb9   :  { %159 = vpow2.f32 %v71_v9 }
  0xc2   :  { %v158_v10 = vpop.eup %157 }
  0xc3   :  { %v73_v11 = vsel %vm60_vm0, %v158_v10, 0.0 }
  0xc4   :  { %74 = vadd.xlane.f32.xlu1 %v73_v11 }
  0xc6   :  { %v160_v12 = vpop.eup %159 }
  0xc7   :  { %v76_v13 = vsel %vm60_vm0, %v160_v12, 0.0 }
  0xc8   :  { %77 = vadd.xlane.f32.xlu1 %v76_v13 }
 0x14d   :  { %v75_v14 = vpop.xlane.xlu1 %74 }
 0x14e   :  { %161 = vrcp.f32 %v75_v14 }
 0x14f   :  { %163 = vlog2.f32 %v75_v14 }
 0x151   :  { %v78_v15 = vpop.xlane.xlu1 %77 }
 0x152   :  { %165 = vrcp.f32 %v78_v15 }
 0x153   :  { %167 = vlog2.f32 %v78_v15 }
 0x15b   :  { %v162_v16 = vpop.eup %161 }
 0x15c   :  { %v164_v17 = vpop.eup %163  ;;  %v87_v18 = vmul.f32 %v162_v16, %v158_v10 }
 0x15d   :  { %v82_v19 = vmul.f32 0.6931472, %v164_v17 }
 0x15e   :  { %v89_v20 = vmax.f32 %v87_v18, 0.0001 }
 0x15f   :  { %v166_v21 = vpop.eup %165  ;;  %v85_v25 = vsub.f32 %v67_v5, %v82_v19 }
 0x160   :  { %v168_v23 = vpop.eup %167  ;;  %v91_v24 = vmin.f32 %v89_v20, 0.9999  ;;  %v88_v26 = vmul.f32 %v166_v21, %v160_v12 }
 0x161   :  { %v84_v27 = vmul.f32 0.6931472, %v168_v23  ;;  %v99_v33 = vmul.f32 %v95_v28, %v85_v25 }
 0x162   :  { %v112_v29 = vmul.f32 %v97_v22, %v91_v24  ;;  %93 = vst.msk [vmem:[#allocation8] sm:$0xff] %vm60_vm0, %v91_v24  ;;  %v90_v30 = vmax.f32 %v88_v26, 0.0001 }
 0x163   :  { %v86_v35 = vsub.f32 %v68_v8, %v84_v27  ;;  %v101_v38 = vsel %vm60_vm0, %v99_v33, 0.0 }
 0x164   :  { %v114_v32 = vsel %vm60_vm0, %v112_v29, 0.0  ;;  %v92_v34 = vmin.f32 %v90_v30, 0.9999 }
 0x165   :  { %115 = vadd.xlane.f32.xlu0 %v114_v32  ;;  %v100_v40 = vmul.f32 %v96_v36, %v86_v35 }
 0x166   :  { %v113_v37 = vmul.f32 %v98_v31, %v92_v34  ;;  %94 = vst.msk [vmem:[#allocation8 + $0x8] sm:$0xff] %vm60_vm0, %v92_v34 }
 0x167   :  { %v104_v41 = vsel %vm60_vm0, %v100_v40, 0.0 }
 0x168   :  { %v117_v39 = vsel %vm60_vm0, %v113_v37, 0.0 }
 0x169   :  { %102 = vadd.xlane.f32.xlu0 %v101_v38  ;;  %118 = vadd.xlane.f32.xlu1 %v117_v39 }
 0x16d   :  { %105 = vadd.xlane.f32.xlu1 %v104_v41 }
 0x16e   :  { %244 = shalt.err (!%p241_p5)
}
 0x16f   :  { %140 = dma.vmem_to_hbm [thread:$0]  %s135_s2, 256, %s339_s3, [#allocation4], %s261_s20, %s261_s20, %s262_s21   ;;  %vm109_vm1 = vcmask 7168   ;;  %vm126_vm2 = vcmask 15368  }
 0x1ee   :  { %v116_v42 = vpop.xlane.xlu0 %115 }
 0x1ef   :  { %v120_v43 = vsub.f32 1.0, %v116_v42 }
 0x1f1   :  { %169 = vlog2.f32 %v120_v43 }
 0x1f2   :  { %v119_v44 = vpop.xlane.xlu1 %118  ;;  %v103_v45 = vpop.xlane.xlu0 %102 }
 0x1f3   :  { %v121_v46 = vsub.f32 1.0, %v119_v44  ;;  %v107_v47 = vsub.f32 0.0, %v103_v45 }
 0x1f5   :  { %171 = vlog2.f32 %v121_v46  ;;  %110 = vst.msk [vmem:[%s340_s4] sm:$0xff] %vm109_vm1, %v107_v47 }
 0x1f6   :  { %v106_v48 = vpop.xlane.xlu1 %105 }
 0x1f7   :  { %v108_v49 = vsub.f32 0.0, %v106_v48 }
 0x1f9   :  { %111 = vst.msk [vmem:[%s340_s4 + $0x8] sm:$0xff] %vm109_vm1, %v108_v49 }
 0x1fe   :  { %v170_v50 = vpop.eup %169 }
 0x1ff   :  { %v123_v51 = vmul.f32 0.6931472, %v170_v50 }
 0x201   :  { %127 = vst.msk [vmem:[%s340_s4] sm:$0xff] %vm126_vm2, %v123_v51 }
 0x202   :  { %v172_v52 = vpop.eup %171 }
 0x203   :  { %v125_v53 = vmul.f32 0.6931472, %v172_v52 }
 0x205   :  { %128 = vst.msk [vmem:[%s340_s4 + $0x8] sm:$0xff] %vm126_vm2, %v125_v53 }
 0x206   :  { %257 = dma.done.wait [#allocation4], 256  }
 0x207   :  { %258 = vsyncadd [#allocation4], 4294967040 }
 0x208   :  { %148 = vsyncpa [#allocation3], 1 }
 0x209   :  { %149 = vsyncpa [#allocation6], 1 }
 0x20a   :  { %150 = vsyncpa [#allocation4], 1 }

</bundles_post_ra>
